<compile_context>
chip_gen: v6e
topology: v6e:2x2x1
jax: 0.10.0
libtpu: 0.0.40
codegen_flags: <defaults>
</compile_context>

<pallas_src>
import functools

import jax
import jax.numpy as jnp
from jax.experimental import pallas as pl
from jax.experimental.pallas import tpu as pltpu


def actor_mean_kernel(obs_ref, w1_ref, b1_ref, w2_ref, b2_ref, w3_ref, b3_ref,
                      mean_ref):
    # MXU input dtype (f32 or bf16); accumulation is always f32 via preferred_element_type.
    cdt = w1_ref.dtype
    # Hidden layer 1: Linear + ReLU (bias add / ReLU in f32 on the VPU).
    h = jnp.dot(obs_ref[...], w1_ref[...], preferred_element_type=jnp.float32)
    h = jnp.maximum(h + b1_ref[...], 0.0).astype(cdt)
    # Hidden layer 2: Linear + ReLU.
    h = jnp.dot(h, w2_ref[...], preferred_element_type=jnp.float32)
    h = jnp.maximum(h + b2_ref[...], 0.0).astype(cdt)
    # Output layer: Linear -> mean of the Normal. Last dim is the full (unpadded)
    # n_actions extent -> masked store in-kernel, but no padding bytes to HBM and no
    # wrapper slice / extra HBM pass afterwards.
    mean_ref[...] = (
        jnp.dot(h, w3_ref[...], preferred_element_type=jnp.float32) + b3_ref[...]
    )


def prepare_actor_params(params, mxu_dtype=jnp.float32):
    """One-time (out-of-forward) parameter prep: MXU dtype casts + std = exp(log_std)."""
    w1, b1, w2, b2, w3, b3, log_std = params
    std = jnp.exp(log_std).reshape(-1).astype(jnp.float32)
    return (w1.astype(mxu_dtype), b1.astype(jnp.float32),
            w2.astype(mxu_dtype), b2.astype(jnp.float32),
            w3.astype(mxu_dtype), b3.astype(jnp.float32), std)


def actor_continuous_forward(obs, prepared, *, block_b=4096):
    """Returns (mean, std) of the Normal distribution produced by ActorContinuous.

    mean: (B, n_actions) float32, std: (n_actions,) float32.
    `prepared` comes from prepare_actor_params (weights possibly bf16 for the MXU fast
    path; biases and std are always float32).
    """
    w1, b1, w2, b2, w3, b3, std = prepared
    B, obs_dim = obs.shape
    n_actions = w3.shape[1]

    # Only per-call prep left inside the (jitted) forward: the obs cast (no-op for f32).
    obs_c = obs.astype(w1.dtype)

    # Batch tile: full batch if it fits in one tile, else block_b rounded DOWN to a
    # multiple of 8 (enforces the (8,128) sublane divisibility rule defensively).
    if B <= block_b:
        tb = B
    else:
        tb = max(8, (block_b // 8) * 8)
    grid = (pl.cdiv(B, tb),)

    # Constant index_map -> block stays VMEM-resident across the batch grid (no re-DMA).
    def resident(shape):
        return pl.BlockSpec(shape, lambda i: (0, 0))

    mean = pl.pallas_call(
        actor_mean_kernel,
        out_shape=jax.ShapeDtypeStruct((B, n_actions), jnp.float32),
        grid=grid,
        in_specs=[
            pl.BlockSpec((tb, obs_dim), lambda i: (i, 0)),   # streamed per batch tile
            resident(w1.shape), resident(b1.shape),
            resident(w2.shape), resident(b2.shape),
            resident(w3.shape), resident(b3.shape),
        ],
        out_specs=pl.BlockSpec((tb, n_actions), lambda i: (i, 0)),
        compiler_params=pltpu.CompilerParams(
            dimension_semantics=("parallel",),
        ),
    )(obs_c, w1, b1, w2, b2, w3, b3)

    # std does not depend on obs -> already computed once in prepare_actor_params.
    return mean, std


def init_params(key, obs_dim, n_actions, n_hidden_units, log_std_init=0.0):
    """Deterministic synthetic parameters (PyTorch Linear shapes, pre-transposed)."""
    k1, k2, k3, k4, k5, k6 = jax.random.split(key, 6)
    scale = 0.1
    w1 = scale * jax.random.normal(k1, (obs_dim, n_hidden_units), jnp.float32)
    b1 = scale * jax.random.normal(k2, (1, n_hidden_units), jnp.float32)
    w2 = scale * jax.random.normal(k3, (n_hidden_units, n_hidden_units), jnp.float32)
    b2 = scale * jax.random.normal(k4, (1, n_hidden_units), jnp.float32)
    w3 = scale * jax.random.normal(k5, (n_hidden_units, n_actions), jnp.float32)
    b3 = scale * jax.random.normal(k6, (1, n_actions), jnp.float32)
    log_std = jnp.full((1, n_actions), log_std_init, jnp.float32)
    return (w1, b1, w2, b2, w3, b3, log_std)


if __name__ == "__main__":
    # Small shapes implied by the module: obs (batch, obs_dim), 2 hidden layers.
    batch, obs_dim, n_actions, n_hidden_units = 64, 32, 8, 32

    key = jax.random.PRNGKey(0)
    k_obs, k_params = jax.random.split(key)
    obs = jax.random.normal(k_obs, (batch, obs_dim), jnp.float32)
    params = init_params(k_params, obs_dim, n_actions, n_hidden_units, log_std_init=0.0)

    # Pure-JAX reference of the same forward pass.
    w1, b1, w2, b2, w3, b3, log_std = params
    h = jnp.maximum(obs @ w1 + b1, 0.0)
    h = jnp.maximum(h @ w2 + b2, 0.0)
    mean_ref = h @ w3 + b3
    std_ref = jnp.exp(log_std)[0]

    # f32 path, single batch tile (B <= block_b): exact PyTorch semantics.
    prep_f32 = prepare_actor_params(params, mxu_dtype=jnp.float32)
    fwd = jax.jit(functools.partial(actor_continuous_forward, block_b=4096))
    mean, std = fwd(obs, prep_f32)
    jax.block_until_ready((mean, std))
    assert mean.shape == (batch, n_actions) and std.shape == (n_actions,)
    assert jnp.allclose(mean, mean_ref, atol=1e-5), "mean mismatch (f32, single tile)"
    assert jnp.allclose(std, std_ref, atol=1e-6), "std mismatch"

    # f32 path, multi-tile grid with a ragged last batch tile (64 = 24 + 24 + 16).
    fwd_tiled = jax.jit(functools.partial(actor_continuous_forward, block_b=24))
    mean_t, _ = fwd_tiled(obs, prep_f32)
    jax.block_until_ready(mean_t)
    assert jnp.allclose(mean_t, mean_ref, atol=1e-5), "mean mismatch (ragged tiles)"

    # bf16 MXU-input fast path (valid on v5e/v6e/v7x); f32 accumulation -> ~1e-3 error.
    prep_bf16 = prepare_actor_params(params, mxu_dtype=jnp.bfloat16)
    mean_b, std_b = fwd(obs, prep_bf16)
    jax.block_until_ready((mean_b, std_b))
    assert jnp.allclose(mean_b, mean_ref, atol=5e-2, rtol=5e-2), "mean mismatch (bf16)"
    assert jnp.allclose(std_b, std_ref, atol=1e-6), "std mismatch (bf16)"

    print("KERNEL_OK")
</pallas_src>

<mosaic_0001>
module attributes {stable_mosaic.version = 11 : i64} {
  func.func @actor_mean_kernel(%arg0: i32, %arg1: memref<64x32xf32, #tpu.memory_space<vmem>>, %arg2: memref<32x32xf32, #tpu.memory_space<vmem>>, %arg3: memref<1x32xf32, #tpu.memory_space<vmem>>, %arg4: memref<32x32xf32, #tpu.memory_space<vmem>>, %arg5: memref<1x32xf32, #tpu.memory_space<vmem>>, %arg6: memref<32x8xf32, #tpu.memory_space<vmem>>, %arg7: memref<1x8xf32, #tpu.memory_space<vmem>>, %arg8: memref<64x8xf32, #tpu.memory_space<vmem>>) attributes {dimension_semantics = [#tpu.dimension_semantics<parallel>], iteration_bounds = array<i64: 1>, scalar_prefetch = 0 : i64, scratch_operands = 0 : i64, tpu.core_type = #tpu.core_type<tc>, window_params = [{transform_indices = @transform_0, window_bounds = array<i64: 64, 32>}, {pipeline_mode = #tpu.pipeline_mode<synchronous>, transform_indices = @transform_1, window_bounds = array<i64: 32, 32>}, {pipeline_mode = #tpu.pipeline_mode<synchronous>, transform_indices = @transform_2, window_bounds = array<i64: 1, 32>}, {pipeline_mode = #tpu.pipeline_mode<synchronous>, transform_indices = @transform_3, window_bounds = array<i64: 32, 32>}, {pipeline_mode = #tpu.pipeline_mode<synchronous>, transform_indices = @transform_4, window_bounds = array<i64: 1, 32>}, {pipeline_mode = #tpu.pipeline_mode<synchronous>, transform_indices = @transform_5, window_bounds = array<i64: 32, 8>}, {pipeline_mode = #tpu.pipeline_mode<synchronous>, transform_indices = @transform_6, window_bounds = array<i64: 1, 8>}, {transform_indices = @transform_7, window_bounds = array<i64: 64, 8>}]} {
    %c0 = arith.constant 0 : index
    %c0_0 = arith.constant 0 : index
    %0 = vector.load %arg1[%c0, %c0_0] : memref<64x32xf32, #tpu.memory_space<vmem>>, vector<64x32xf32>
    %c0_1 = arith.constant 0 : index
    %c0_2 = arith.constant 0 : index
    %1 = vector.load %arg2[%c0_1, %c0_2] : memref<32x32xf32, #tpu.memory_space<vmem>>, vector<32x32xf32>
    %cst = arith.constant dense<0.000000e+00> : vector<64x32xf32>
    %2 = tpu.matmul %0, %1, %cst {dimension_numbers = #tpu.dot_dimension_numbers<[1], [0], [0], [1], [0, 0, 1, 1], [], []>} : vector<64x32xf32>, vector<32x32xf32>, vector<64x32xf32> -> vector<64x32xf32>
    %c0_3 = arith.constant 0 : index
    %c0_4 = arith.constant 0 : index
    %3 = vector.load %arg3[%c0_3, %c0_4] : memref<1x32xf32, #tpu.memory_space<vmem>>, vector<1x32xf32>
    %4 = vector.broadcast %3 : vector<1x32xf32> to vector<64x32xf32>
    %5 = arith.addf %2, %4 : vector<64x32xf32>
    %cst_5 = arith.constant 0.000000e+00 : f32
    %6 = vector.broadcast %cst_5 : f32 to vector<64x32xf32>
    %7 = arith.maximumf %5, %6 : vector<64x32xf32>
    %c0_6 = arith.constant 0 : index
    %c0_7 = arith.constant 0 : index
    %8 = vector.load %arg4[%c0_6, %c0_7] : memref<32x32xf32, #tpu.memory_space<vmem>>, vector<32x32xf32>
    %cst_8 = arith.constant dense<0.000000e+00> : vector<64x32xf32>
    %9 = tpu.matmul %7, %8, %cst_8 {dimension_numbers = #tpu.dot_dimension_numbers<[1], [0], [0], [1], [0, 0, 1, 1], [], []>} : vector<64x32xf32>, vector<32x32xf32>, vector<64x32xf32> -> vector<64x32xf32>
    %c0_9 = arith.constant 0 : index
    %c0_10 = arith.constant 0 : index
    %10 = vector.load %arg5[%c0_9, %c0_10] : memref<1x32xf32, #tpu.memory_space<vmem>>, vector<1x32xf32>
    %11 = vector.broadcast %10 : vector<1x32xf32> to vector<64x32xf32>
    %12 = arith.addf %9, %11 : vector<64x32xf32>
    %cst_11 = arith.constant 0.000000e+00 : f32
    %13 = vector.broadcast %cst_11 : f32 to vector<64x32xf32>
    %14 = arith.maximumf %12, %13 : vector<64x32xf32>
    %c0_12 = arith.constant 0 : index
    %c0_13 = arith.constant 0 : index
    %15 = vector.load %arg6[%c0_12, %c0_13] : memref<32x8xf32, #tpu.memory_space<vmem>>, vector<32x8xf32>
    %cst_14 = arith.constant dense<0.000000e+00> : vector<64x8xf32>
    %16 = tpu.matmul %14, %15, %cst_14 {dimension_numbers = #tpu.dot_dimension_numbers<[1], [0], [0], [1], [0, 0, 1, 1], [], []>} : vector<64x32xf32>, vector<32x8xf32>, vector<64x8xf32> -> vector<64x8xf32>
    %c0_15 = arith.constant 0 : index
    %c0_16 = arith.constant 0 : index
    %17 = vector.load %arg7[%c0_15, %c0_16] : memref<1x8xf32, #tpu.memory_space<vmem>>, vector<1x8xf32>
    %18 = vector.broadcast %17 : vector<1x8xf32> to vector<64x8xf32>
    %19 = arith.addf %16, %18 : vector<64x8xf32>
    %c0_17 = arith.constant 0 : index
    %c0_18 = arith.constant 0 : index
    %20 = vector.load %arg8[%c0_17, %c0_18] : memref<64x8xf32, #tpu.memory_space<vmem>>, vector<64x8xf32>
    tpu.vector_store %arg8[%c0_17, %c0_18], %19 {strides = array<i32>} : memref<64x8xf32, #tpu.memory_space<vmem>>, vector<64x8xf32>,
    return
  }
  func.func @transform_0(%arg0: i32) -> (i32, i32) {
    %c0_i32 = arith.constant 0 : i32
    %c0_i32_0 = arith.constant 0 : i32
    return %arg0, %c0_i32 : i32, i32
  }
  func.func @transform_1(%arg0: i32) -> (i32, i32) {
    %c0_i32 = arith.constant 0 : i32
    %c0_i32_0 = arith.constant 0 : i32
    %c0_i32_1 = arith.constant 0 : i32
    return %c0_i32, %c0_i32_0 : i32, i32
  }
  func.func @transform_2(%arg0: i32) -> (i32, i32) {
    %c0_i32 = arith.constant 0 : i32
    %c0_i32_0 = arith.constant 0 : i32
    %c0_i32_1 = arith.constant 0 : i32
    return %c0_i32, %c0_i32_0 : i32, i32
  }
  func.func @transform_3(%arg0: i32) -> (i32, i32) {
    %c0_i32 = arith.constant 0 : i32
    %c0_i32_0 = arith.constant 0 : i32
    %c0_i32_1 = arith.constant 0 : i32
    return %c0_i32, %c0_i32_0 : i32, i32
  }
  func.func @transform_4(%arg0: i32) -> (i32, i32) {
    %c0_i32 = arith.constant 0 : i32
    %c0_i32_0 = arith.constant 0 : i32
    %c0_i32_1 = arith.constant 0 : i32
    return %c0_i32, %c0_i32_0 : i32, i32
  }
  func.func @transform_5(%arg0: i32) -> (i32, i32) {
    %c0_i32 = arith.constant 0 : i32
    %c0_i32_0 = arith.constant 0 : i32
    %c0_i32_1 = arith.constant 0 : i32
    return %c0_i32, %c0_i32_0 : i32, i32
  }
  func.func @transform_6(%arg0: i32) -> (i32, i32) {
    %c0_i32 = arith.constant 0 : i32
    %c0_i32_0 = arith.constant 0 : i32
    %c0_i32_1 = arith.constant 0 : i32
    return %c0_i32, %c0_i32_0 : i32, i32
  }
  func.func @transform_7(%arg0: i32) -> (i32, i32) {
    %c0_i32 = arith.constant 0 : i32
    %c0_i32_0 = arith.constant 0 : i32
    return %arg0, %c0_i32 : i32, i32
  }
}

</mosaic_0001>

<bundles_post_ra>
// kernel: actor_continuous_forward.1
= control target key start
LH: loop header
LB: loop body
LE: loop exit
PB: predicated region body
PF: predicated region fallthrough
CT: control target
= control target key end

     0   :  { %vm45_vm0 = vcmask 261120   ;;  %vm471_vm1 = vcmask 64512   ;;  %s780_s1 = inlined_call_operand.vmem [shape: f32[32,32], index: 1, kind: input, shape index: {}]   ;;  %s781_s0 = inlined_call_operand.vmem [shape: f32[64,32], index: 0, kind: input, shape index: {}]   ;;  %s782_s3 = inlined_call_operand.vmem [shape: f32[32,32], index: 3, kind: input, shape index: {}]   ;;  %s783_s5 = inlined_call_operand.vmem [shape: f32[32,8], index: 5, kind: input, shape index: {}]   ;;  %s784_s2 = inlined_call_operand.vmem [shape: f32[1,32], index: 2, kind: input, shape index: {}]   ;;  %s785_s4 = inlined_call_operand.vmem [shape: f32[1,32], index: 4, kind: input, shape index: {}]   ;;  %s786_s6 = inlined_call_operand.vmem [shape: f32[1,8], index: 6, kind: input, shape index: {}]   ;;  %s787_s7 = inlined_call_operand.vmem [shape: f32[64,8], index: 7, kind: output, shape index: {}]  }
   0x1   :  { %v37_v0 = vld [vmem:[%s780_s1 + $0x18] sm:$0xff]  ;;  %v36_v1 = vld [vmem:[%s780_s1 + $0x10] sm:$0xff]  ;;  %v26_v2 = vld [vmem:[%s781_s0] sm:$0xff] }
   0x2   :  { %547 = vmatprep.subr.mxu0 %v37_v0  ;;  %607 = vmatprep.subr.mxu1 %v37_v0  ;;  %v35_v3 = vld [vmem:[%s780_s1 + $0x8] sm:$0xff]  ;;  %v34_v4 = vld [vmem:[%s780_s1] sm:$0xff]  ;;  %v28_v6 = vld [vmem:[%s781_s0 + $0x10] sm:$0xff] }
   0x3   :  { %548 = vmatpush3.msra.mxu0 %v37_v0  ;;  %611 = vmatpush3.msra.mxu1 %v37_v0  ;;  %v27_v5 = vld [vmem:[%s781_s0 + $0x8] sm:$0xff]  ;;  %v30_v7 = vld [vmem:[%s781_s0 + $0x20] sm:$0xff]  ;;  %v186_v9 = vld [vmem:[%s782_s3 + $0x18] sm:$0xff] }
   0x4   :  { %549 = vmatprep.subr.mxu0 %v36_v1  ;;  %555 = vmatprep.mubr.msk.f32.mxu0 %vm45_vm0, %v26_v2  ;;  %v31_v8 = vld [vmem:[%s781_s0 + $0x28] sm:$0xff]  ;;  %v32_v10 = vld [vmem:[%s781_s0 + $0x30] sm:$0xff]  ;;  %v29_v11 = vld [vmem:[%s781_s0 + $0x18] sm:$0xff] }
   0x5   :  { %550 = vmatpush3.msra.mxu0 %v36_v1  ;;  %608 = vmatprep.subr.mxu1 %v36_v1  ;;  %v33_v12 = vld [vmem:[%s781_s0 + $0x38] sm:$0xff]  ;;  %v185_v13 = vld [vmem:[%s782_s3 + $0x10] sm:$0xff]  ;;  %v184_v14 = vld [vmem:[%s782_s3 + $0x8] sm:$0xff] }
   0x6   :  { %551 = vmatprep.subr.mxu0 %v35_v3  ;;  %612 = vmatpush3.msra.mxu1 %v36_v1  ;;  %v183_v15 = vld [vmem:[%s782_s3] sm:$0xff]  ;;  %v334_v16 = vld [vmem:[%s783_s5 + $0x18] sm:$0xff]  ;;  %v333_v42 = vld [vmem:[%s783_s5 + $0x10] sm:$0xff] }
   0x7   :  { %552 = vmatpush3.msra.mxu0 %v35_v3  ;;  %609 = vmatprep.subr.mxu1 %v35_v3  ;;  %v484_v17 = vld [vmem:[%s784_s2] ss:$0 sm:$0xff]  ;;  %v332_v43 = vld [vmem:[%s783_s5 + $0x8] sm:$0xff] }
   0x8   :  { %553 = vmatprep.subr.mxu0 %v34_v4  ;;  %613 = vmatpush3.msra.mxu1 %v35_v3  ;;  %v331_v44 = vld [vmem:[%s783_s5] sm:$0xff] }
   0x9   :  { %554 = vmatpush3.msra.mxu0 %v34_v4  ;;  %610 = vmatprep.subr.mxu1 %v34_v4  ;;  %v493_v45 = vld [vmem:[%s785_s4] ss:$0 sm:$0xff] }
   0xa   :  { %556 = vmatmul.mubr.msk.f32.vlgmr.msra.gmra.mxu0 %vm45_vm0, %v27_v5  ;;  %614 = vmatpush3.msra.mxu1 %v34_v4 }
   0xb   :  { %558 = vmatprep.mubr.msk.f32.mxu0 %vm45_vm0, %v28_v6  ;;  %561 = vmatprep.mubr.msk.f32.mxu1 %vm45_vm0, %v30_v7  ;;  %v502_v6 = vld [vmem:[%s786_s6] ss:$0 sm:$0xff] }
   0xc   :  { %562 = vmatmul.mubr.msk.f32.vlgmr.msra.gmra.mxu1 %vm45_vm0, %v31_v8  ;;  %567 = vmatprep.subr.mxu1 %v186_v9 }
   0xd   :  { %564 = vmatprep.mubr.msk.f32.mxu1 %vm45_vm0, %v32_v10  ;;  %568 = vmatpush3.msra.mxu1 %v186_v9 }
   0xe   :  { %559 = vmatmul.mubr.msk.f32.gmra.mxu0 %vm45_vm0, %v29_v11  ;;  %569 = vmatprep.subr.mxu1 %v185_v13 }
   0xf   :  { %570 = vmatpush3.msra.mxu1 %v185_v13  ;;  %587 = vmatprep.subr.mxu0 %v334_v16 }
  0x10   :  { %565 = vmatmul.mubr.msk.f32.gmra.mxu1 %vm45_vm0, %v33_v12  ;;  %571 = vmatprep.subr.mxu1 %v184_v14 }
  0x11   :  { %572 = vmatpush3.msra.mxu1 %v184_v14  ;;  %588 = vmatpush3.msra.mxu0 %v334_v16 }
  0x12   :  { %573 = vmatprep.subr.mxu1 %v183_v15  ;;  %589 = vmatprep.subr.mxu0 %v333_v42 }
  0x13   :  { %574 = vmatpush3.msra.mxu1 %v183_v15  ;;  %590 = vmatpush3.msra.mxu0 %v333_v42 }
  0x14   :  { %591 = vmatprep.subr.mxu0 %v332_v43 }
  0x15   :  { %592 = vmatpush3.msra.mxu0 %v332_v43 }
  0x16   :  { %593 = vmatprep.subr.mxu0 %v331_v44 }
  0x17   :  { %594 = vmatpush3.msra.mxu0 %v331_v44 }
  0xca   :  { %v557_v18 = vpop.f32.mrf.mxu0 }
  0xcb   :  { %v142_v19 = vadd.f32 %v557_v18, %v484_v17 }
  0xcc   :  { %v136_v20 = vpop.f32.mrf.mxu0  ;;  %v563_v21 = vpop.f32.mrf.mxu1 }
  0xcd   :  { %v137_v22 = vadd.f32 %v484_v17, %v136_v20  ;;  %v176_v27 = vmax.f32 %v142_v19, 0.0  ;;  %v162_v37 = vadd.f32 %v563_v21, %v484_v17 }
  0xce   :  { %v560_v23 = vpop.f32.mrf.mxu0  ;;  %v156_v24 = vpop.f32.mrf.mxu1 }
  0xcf   :  { %v175_v25 = vmax.f32 %v137_v22, 0.0  ;;  %v157_v26 = vadd.f32 %v484_v17, %v156_v24  ;;  %v152_v28 = vadd.f32 %v560_v23, %v484_v17  ;;  %v180_v39 = vmax.f32 %v162_v37, 0.0 }
  0xd0   :  { %v146_v29 = vpop.f32.mrf.mxu0  ;;  %v566_v30 = vpop.f32.mrf.mxu1 }
  0xd1   :  { %v147_v31 = vadd.f32 %v484_v17, %v146_v29  ;;  %575 = vmatprep.mubr.msk.f32.mxu1 %vm45_vm0, %v175_v25  ;;  %v179_v34 = vmax.f32 %v157_v26, 0.0  ;;  %v178_v36 = vmax.f32 %v152_v28, 0.0  ;;  %v172_v40 = vadd.f32 %v566_v30, %v484_v17 }
  0xd2   :  { %576 = vmatmul.mubr.msk.f32.vlgmr.msra.gmra.mxu1 %vm45_vm0, %v176_v27  ;;  %v166_v32 = vpop.f32.mrf.mxu1 }
  0xd3   :  { %v177_v33 = vmax.f32 %v147_v31, 0.0  ;;  %v167_v35 = vadd.f32 %v484_v17, %v166_v32  ;;  %v182_v41 = vmax.f32 %v172_v40, 0.0 }
  0xd5   :  { %578 = vmatprep.mubr.msk.f32.mxu1 %vm45_vm0, %v177_v33  ;;  %v181_v38 = vmax.f32 %v167_v35, 0.0 }
  0xd6   :  { %579 = vmatmul.mubr.msk.f32.gmra.mxu1 %vm45_vm0, %v178_v36 }
  0xd7   :  { %581 = vmatprep.mubr.msk.f32.mxu1 %vm45_vm0, %v179_v34 }
  0xda   :  { %582 = vmatmul.mubr.msk.f32.gmra.mxu1 %vm45_vm0, %v180_v39 }
  0xdb   :  { %584 = vmatprep.mubr.msk.f32.mxu1 %vm45_vm0, %v181_v38 }
  0xde   :  { %585 = vmatmul.mubr.msk.f32.gmra.mxu1 %vm45_vm0, %v182_v41 }
 0x192   :  { %v577_v46 = vpop.f32.mrf.mxu1 }
 0x193   :  { %v290_v47 = vadd.f32 %v577_v46, %v493_v45 }
 0x194   :  { %v284_v48 = vpop.f32.mrf.mxu1 }
 0x195   :  { %v285_v49 = vadd.f32 %v493_v45, %v284_v48  ;;  %v324_v52 = vmax.f32 %v290_v47, 0.0 }
 0x196   :  { %v580_v50 = vpop.f32.mrf.mxu1 }
 0x197   :  { %v323_v51 = vmax.f32 %v285_v49, 0.0  ;;  %v300_v53 = vadd.f32 %v580_v50, %v493_v45 }
 0x198   :  { %v294_v54 = vpop.f32.mrf.mxu1 }
 0x199   :  { %v295_v55 = vadd.f32 %v493_v45, %v294_v54  ;;  %595 = vmatprep.mubr.msk.f32.mxu0 %vm45_vm0, %v323_v51  ;;  %v326_v58 = vmax.f32 %v300_v53, 0.0 }
 0x19a   :  { %v583_v56 = vpop.f32.mrf.mxu1  ;;  %596 = vmatmul.mubr.msk.f32.vlgmr.msra.gmra.mxu0 %vm45_vm0, %v324_v52 }
 0x19b   :  { %v325_v57 = vmax.f32 %v295_v55, 0.0  ;;  %v310_v59 = vadd.f32 %v583_v56, %v493_v45 }
 0x19c   :  { %v304_v60 = vpop.f32.mrf.mxu1 }
 0x19d   :  { %v305_v61 = vadd.f32 %v493_v45, %v304_v60  ;;  %598 = vmatprep.mubr.msk.f32.mxu0 %vm45_vm0, %v325_v57  ;;  %v328_v0 = vmax.f32 %v310_v59, 0.0 }
 0x19e   :  { %v586_v62 = vpop.f32.mrf.mxu1  ;;  %599 = vmatmul.mubr.msk.f32.gmra.mxu0 %vm45_vm0, %v326_v58 }
 0x19f   :  { %v327_v63 = vmax.f32 %v305_v61, 0.0  ;;  %v320_v1 = vadd.f32 %v586_v62, %v493_v45 }
 0x1a0   :  { %v314_v2 = vpop.f32.mrf.mxu1 }
 0x1a1   :  { %v315_v3 = vadd.f32 %v493_v45, %v314_v2  ;;  %601 = vmatprep.mubr.msk.f32.mxu0 %vm45_vm0, %v327_v63  ;;  %v330_v5 = vmax.f32 %v320_v1, 0.0 }
 0x1a2   :  { %602 = vmatmul.mubr.msk.f32.gmra.mxu0 %vm45_vm0, %v328_v0 }
 0x1a3   :  { %v329_v4 = vmax.f32 %v315_v3, 0.0 }
 0x1a5   :  { %604 = vmatprep.mubr.msk.f32.mxu0 %vm45_vm0, %v329_v4 }
 0x1a6   :  { %605 = vmatmul.mubr.msk.f32.gmra.mxu0 %vm45_vm0, %v330_v5 }
 0x25a   :  { %v597_v7 = vpop.f32.mrf.mxu0 }
 0x25b   :  { %v438_v8 = vadd.f32 %v597_v7, %v502_v6 }
 0x25c   :  { %v432_v9 = vpop.f32.mrf.mxu0 }
 0x25d   :  { %473 = vst.msk [vmem:[%s787_s7 + $0x8] sm:$0xff] %vm471_vm1, %v438_v8  ;;  %v433_v10 = vadd.f32 %v502_v6, %v432_v9 }
 0x25e   :  { %v600_v11 = vpop.f32.mrf.mxu0 }
 0x25f   :  { %472 = vst.msk [vmem:[%s787_s7] sm:$0xff] %vm471_vm1, %v433_v10  ;;  %v448_v12 = vadd.f32 %v600_v11, %v502_v6 }
 0x260   :  { %v442_v13 = vpop.f32.mrf.mxu0 }
 0x261   :  { %475 = vst.msk [vmem:[%s787_s7 + $0x18] sm:$0xff] %vm471_vm1, %v448_v12  ;;  %v443_v14 = vadd.f32 %v502_v6, %v442_v13 }
 0x262   :  { %v603_v15 = vpop.f32.mrf.mxu0 }
 0x263   :  { %474 = vst.msk [vmem:[%s787_s7 + $0x10] sm:$0xff] %vm471_vm1, %v443_v14  ;;  %v458_v16 = vadd.f32 %v603_v15, %v502_v6 }
 0x264   :  { %v452_v17 = vpop.f32.mrf.mxu0 }
 0x265   :  { %477 = vst.msk [vmem:[%s787_s7 + $0x28] sm:$0xff] %vm471_vm1, %v458_v16  ;;  %v453_v18 = vadd.f32 %v502_v6, %v452_v17 }
 0x266   :  { %v606_v19 = vpop.f32.mrf.mxu0 }
 0x267   :  { %476 = vst.msk [vmem:[%s787_s7 + $0x20] sm:$0xff] %vm471_vm1, %v453_v18  ;;  %v468_v20 = vadd.f32 %v606_v19, %v502_v6 }
 0x268   :  { %v462_v21 = vpop.f32.mrf.mxu0 }
 0x269   :  { %479 = vst.msk [vmem:[%s787_s7 + $0x38] sm:$0xff] %vm471_vm1, %v468_v20  ;;  %v463_v22 = vadd.f32 %v502_v6, %v462_v21 }
 0x26b   :  { %478 = vst.msk [vmem:[%s787_s7 + $0x30] sm:$0xff] %vm471_vm1, %v463_v22 }

</bundles_post_ra>
